<compile_context>
chip_gen: v5e
topology: v5e:2x2
jax: 0.10.0
libtpu: 0.0.40
codegen_flags: <defaults>
</compile_context>

<pallas_src>
from functools import partial

import jax
import jax.numpy as jnp
import numpy as np
from jax import lax
from jax.experimental import pallas as pl
from jax.experimental.pallas import tpu as pltpu


def _channel_attention_kernel(x_ref, w1_ref, w2_ref, o_ref,
                              sum_acc, max_acc, *, hw, needs_mask):
    # x_ref block: (1, C, T)   w1: (Cr, C)   w2: (C, Cr)   o_ref: (1, C, 1)
    # sum_acc / max_acc: (C, 1) f32 VMEM scratch, persistent across the grid.
    s = pl.program_id(1)

    @pl.when(s == 0)
    def _init():
        sum_acc[...] = jnp.zeros_like(sum_acc)
        max_acc[...] = jnp.full_like(max_acc, -jnp.inf)

    x = x_ref[0]                                             # (C, T), native dtype
    C, T = x.shape

    if needs_mask:
        # Ragged tail tile: lanes at or beyond the valid spatial extent hold
        # whatever was left in VMEM — neutralize them (0 for sum, -inf for max).
        col = lax.broadcasted_iota(jnp.int32, (C, T), 1)
        valid = col < (hw - s * T)
        zero = jnp.array(0.0, dtype=x.dtype)
        neg_inf = jnp.array(float("-inf"), dtype=x.dtype)
        x_sum_in = jnp.where(valid, x, zero)
        x_max_in = jnp.where(valid, x, neg_inf)
    else:
        x_sum_in = x
        x_max_in = x

    # Partial spatial reductions over the lane axis.  Sum accumulates in f32;
    # max reduces in the input dtype and only the (C, 1) result is cast.
    sum_acc[...] += jnp.sum(x_sum_in, axis=-1, keepdims=True, dtype=jnp.float32)
    max_acc[...] = jnp.maximum(
        max_acc[...],
        jnp.max(x_max_in, axis=-1, keepdims=True).astype(jnp.float32))

    @pl.when(s == pl.num_programs(1) - 1)
    def _finalize():
        inv_hw = 1.0 / hw
        avg = sum_acc[...] * inv_hw                          # (C, 1) f32
        pooled = jnp.concatenate([avg, max_acc[...]], axis=1)    # (C, 2) [avg|max]
        # Shared MLP applied to both pooled columns at once (tiny; once/batch).
        h = jnp.dot(w1_ref[...].astype(jnp.float32), pooled,
                    preferred_element_type=jnp.float32)      # (Cr, 2)
        h = jnp.maximum(h, 0.0)
        y = jnp.dot(w2_ref[...].astype(jnp.float32), h,
                    preferred_element_type=jnp.float32)      # (C, 2)
        gate = jax.nn.sigmoid(y[:, 0:1] + y[:, 1:2])         # (C, 1)
        o_ref[...] = gate[None].astype(o_ref.dtype)          # (1, C, 1)


def _pick_spatial_tile(hw, c, itemsize, target_bytes=8 * 1024 * 1024):
    """Spatial tile for the (C, hw) slab.

    Returns either the full extent hw (always a legal block: full-array dim),
    or a 128-lane-aligned tile of ~target_bytes used with grid = cdiv(hw, t)
    plus in-kernel masking of the ragged tail.
    """
    # Keep per-row contiguous DMA chunks >= ~512 B.
    if itemsize >= 4:
        min_lanes = 128
    elif itemsize == 2:
        min_lanes = 256
    else:
        min_lanes = 512

    max_aligned = (hw // 128) * 128
    if c * hw * itemsize <= target_bytes or max_aligned < min_lanes:
        # Whole spatial extent fits the VMEM budget (or the map is tiny):
        # one full-extent block per batch, no masking needed.
        return hw

    t = (target_bytes // (c * itemsize)) // 128 * 128
    return max(min_lanes, min(t, max_aligned))


def channel_attention(x_nchw, w1, w2, *, spatial_tile=None):
    """x_nchw: (B, C, H, W); w1: (C//16, C); w2: (C, C//16).  Returns (B, C, 1, 1)."""
    B, C, H, W = x_nchw.shape
    Cr = w1.shape[0]
    hw = H * W

    # (B, C, H, W) -> (B, C, H*W): free reshape of the contiguous NCHW layout,
    # no HBM round-trip transpose.
    x = x_nchw.reshape(B, C, hw)

    itemsize = x_nchw.dtype.itemsize
    w_itemsize = w1.dtype.itemsize
    t = spatial_tile if spatial_tile is not None else _pick_spatial_tile(hw, C, itemsize)
    # Block last dim must be a multiple of 128 or exactly the full extent.
    assert t == hw or (t % 128 == 0 and t <= hw), (hw, t)
    n_s = pl.cdiv(hw, t)
    needs_mask = (hw % t) != 0

    kernel = partial(_channel_attention_kernel, hw=hw, needs_mask=needs_mask)

    out = pl.pallas_call(
        kernel,
        out_shape=jax.ShapeDtypeStruct((B, C, 1), x_nchw.dtype),
        grid_spec=pltpu.PrefetchScalarGridSpec(
            num_scalar_prefetch=0,
            grid=(B, n_s),             # batch (parallel) outer, spatial reduction inner
            in_specs=[
                pl.BlockSpec((1, C, t), lambda b, s: (b, 0, s)),
                pl.BlockSpec((Cr, C), lambda b, s: (0, 0)),
                pl.BlockSpec((C, Cr), lambda b, s: (0, 0)),
            ],
            out_specs=pl.BlockSpec((1, C, 1), lambda b, s: (b, 0, 0)),
            scratch_shapes=[
                pltpu.VMEM((C, 1), jnp.float32),   # running sum (f32)
                pltpu.VMEM((C, 1), jnp.float32),   # running max (f32)
            ],
        ),
        compiler_params=pltpu.CompilerParams(
            dimension_semantics=("parallel", "arbitrary"),
            vmem_limit_bytes=48 * 1024 * 1024,     # fits v7x's 64 MiB physical VMEM
        ),
        cost_estimate=pl.CostEstimate(
            flops=int(2 * B * C * hw + 8 * B * C * Cr),
            transcendentals=int(B * C),
            bytes_accessed=int(x.size * itemsize
                               + (w1.size + w2.size) * w_itemsize
                               + B * C * itemsize),
        ),
    )(x, w1, w2)

    return out.reshape(B, C, 1, 1)


def channel_attention_ref(x, w1, w2):
    """Pure-JAX reference matching the PyTorch module."""
    avg = jnp.mean(x, axis=(2, 3))                      # (B, C)
    mx = jnp.max(x, axis=(2, 3))                        # (B, C)

    def mlp(p):
        h = jnp.maximum(p @ w1.T, 0.0)                  # (B, Cr)
        return h @ w2.T                                 # (B, C)

    out = jax.nn.sigmoid(mlp(avg) + mlp(mx))            # (B, C)
    return out[:, :, None, None]                        # (B, C, 1, 1)


if __name__ == "__main__":
    base_key = jax.random.PRNGKey(0)

    def check(case_id, B, C, H, W, spatial_tile=None):
        # in_planes must be >= 16 so that in_planes // 16 >= 1 (module hard-codes 16).
        Cr = C // 16
        kx, kw1, kw2 = jax.random.split(jax.random.fold_in(base_key, case_id), 3)
        x = jax.random.normal(kx, (B, C, H, W), dtype=jnp.float32)
        # PyTorch Conv2d weight shapes (Cr, C, 1, 1) / (C, Cr, 1, 1), squeezed.
        w1 = jax.random.normal(kw1, (Cr, C), dtype=jnp.float32) * 0.1
        w2 = jax.random.normal(kw2, (C, Cr), dtype=jnp.float32) * 0.1

        out = jax.block_until_ready(
            channel_attention(x, w1, w2, spatial_tile=spatial_tile))
        ref = jax.block_until_ready(channel_attention_ref(x, w1, w2))
        assert out.shape == (B, C, 1, 1), out.shape
        np.testing.assert_allclose(np.asarray(out), np.asarray(ref),
                                   rtol=1e-5, atol=1e-5)

    # 1) hw % 128 == 0, single full-spatial block (default tile pick).
    check(0, 2, 32, 16, 16)
    # 2) forced multi-step spatial reduction: exercises the accumulator
    #    init / accumulate / finalize path (2 aligned tiles of 128).
    check(1, 2, 32, 16, 16, spatial_tile=128)
    # 3) hw % 128 != 0, small map: single full-extent (unaligned) block, no mask.
    check(2, 2, 32, 7, 7)
    # 4) ragged tiling: hw = 169 with 128-lane tiles -> masked tail tile.
    check(3, 2, 32, 13, 13, spatial_tile=128)

    print("KERNEL_OK")
</pallas_src>

<mosaic_0001>
module attributes {stable_mosaic.version = 11 : i64} {
  func.func @_channel_attention_kernel(%arg0: i32, %arg1: i32, %arg2: memref<1x32x256xf32, #tpu.memory_space<vmem>>, %arg3: memref<2x32xf32, #tpu.memory_space<vmem>>, %arg4: memref<32x2xf32, #tpu.memory_space<vmem>>, %arg5: memref<1x32x1xf32, #tpu.memory_space<vmem>>, %arg6: memref<32x1xf32, #tpu.memory_space<vmem>>, %arg7: memref<32x1xf32, #tpu.memory_space<vmem>>) attributes {dimension_semantics = [#tpu.dimension_semantics<parallel>, #tpu.dimension_semantics<arbitrary>], iteration_bounds = array<i64: 2, 1>, scalar_prefetch = 0 : i64, scratch_operands = 2 : i64, tpu.core_type = #tpu.core_type<tc>, window_params = [{transform_indices = @transform_0, window_bounds = array<i64: 1, 32, 256>}, {pipeline_mode = #tpu.pipeline_mode<synchronous>, transform_indices = @transform_1, window_bounds = array<i64: 2, 32>}, {pipeline_mode = #tpu.pipeline_mode<synchronous>, transform_indices = @transform_2, window_bounds = array<i64: 32, 2>}, {transform_indices = @transform_3, window_bounds = array<i64: 1, 32, 1>}]} {
    %c0_i32 = arith.constant 0 : i32
    %0 = arith.cmpi eq, %arg1, %c0_i32 : i32
    %1 = arith.extui %0 : i1 to i32
    %c0_i32_0 = arith.constant 0 : i32
    %2 = arith.cmpi ne, %1, %c0_i32_0 : i32
    scf.if %2 {
      %cst_14 = arith.constant 0.000000e+00 : f32
      %18 = vector.broadcast %cst_14 : f32 to vector<32x1xf32>
      %c0_15 = arith.constant 0 : index
      %c0_16 = arith.constant 0 : index
      %19 = vector.load %arg6[%c0_15, %c0_16] : memref<32x1xf32, #tpu.memory_space<vmem>>, vector<32x1xf32>
      tpu.vector_store %arg6[%c0_15, %c0_16], %18 {strides = array<i32>} : memref<32x1xf32, #tpu.memory_space<vmem>>, vector<32x1xf32>,
      %cst_17 = arith.constant 0xFF800000 : f32
      %20 = vector.broadcast %cst_17 : f32 to vector<32x1xf32>
      %c0_18 = arith.constant 0 : index
      %c0_19 = arith.constant 0 : index
      %21 = vector.load %arg7[%c0_18, %c0_19] : memref<32x1xf32, #tpu.memory_space<vmem>>, vector<32x1xf32>
      tpu.vector_store %arg7[%c0_18, %c0_19], %20 {strides = array<i32>} : memref<32x1xf32, #tpu.memory_space<vmem>>, vector<32x1xf32>,
    } else {
    }
    %c0 = arith.constant 0 : index
    %c0_1 = arith.constant 0 : index
    %c0_2 = arith.constant 0 : index
    %3 = vector.load %arg2[%c0, %c0_1, %c0_2] : memref<1x32x256xf32, #tpu.memory_space<vmem>>, vector<1x32x256xf32>
    %4 = vector.shape_cast %3 : vector<1x32x256xf32> to vector<32x256xf32>
    %c0_3 = arith.constant 0 : index
    %c0_4 = arith.constant 0 : index
    %5 = vector.load %arg6[%c0_3, %c0_4] : memref<32x1xf32, #tpu.memory_space<vmem>>, vector<32x1xf32>
    %cst = arith.constant dense<0.000000e+00> : vector<32xf32>
    %6 = vector.multi_reduction <add>, %4, %cst [1] : vector<32x256xf32> to vector<32xf32>
    %7 = vector.shape_cast %6 : vector<32xf32> to vector<32x1xf32>
    %8 = arith.addf %5, %7 : vector<32x1xf32>
    %c0_5 = arith.constant 0 : index
    %c0_6 = arith.constant 0 : index
    %9 = vector.load %arg6[%c0_5, %c0_6] : memref<32x1xf32, #tpu.memory_space<vmem>>, vector<32x1xf32>
    tpu.vector_store %arg6[%c0_5, %c0_6], %8 {strides = array<i32>} : memref<32x1xf32, #tpu.memory_space<vmem>>, vector<32x1xf32>,
    %c0_7 = arith.constant 0 : index
    %c0_8 = arith.constant 0 : index
    %10 = vector.load %arg7[%c0_7, %c0_8] : memref<32x1xf32, #tpu.memory_space<vmem>>, vector<32x1xf32>
    %cst_9 = arith.constant dense<0xFF800000> : vector<32xf32>
    %11 = vector.multi_reduction <maximumf>, %4, %cst_9 [1] : vector<32x256xf32> to vector<32xf32>
    %12 = vector.shape_cast %11 : vector<32xf32> to vector<32x1xf32>
    %13 = arith.maximumf %10, %12 : vector<32x1xf32>
    %c0_10 = arith.constant 0 : index
    %c0_11 = arith.constant 0 : index
    %14 = vector.load %arg7[%c0_10, %c0_11] : memref<32x1xf32, #tpu.memory_space<vmem>>, vector<32x1xf32>
    tpu.vector_store %arg7[%c0_10, %c0_11], %13 {strides = array<i32>} : memref<32x1xf32, #tpu.memory_space<vmem>>, vector<32x1xf32>,
    %c0_i32_12 = arith.constant 0 : i32
    %15 = arith.cmpi eq, %arg1, %c0_i32_12 : i32
    %16 = arith.extui %15 : i1 to i32
    %c0_i32_13 = arith.constant 0 : i32
    %17 = arith.cmpi ne, %16, %c0_i32_13 : i32
    scf.if %17 {
      %c0_14 = arith.constant 0 : index
      %c0_15 = arith.constant 0 : index
      %18 = vector.load %arg6[%c0_14, %c0_15] : memref<32x1xf32, #tpu.memory_space<vmem>>, vector<32x1xf32>
      %cst_16 = arith.constant 3.906250e-03 : f32
      %19 = vector.broadcast %cst_16 : f32 to vector<32x1xf32>
      %20 = arith.mulf %18, %19 : vector<32x1xf32>
      %c0_17 = arith.constant 0 : index
      %c0_18 = arith.constant 0 : index
      %21 = vector.load %arg7[%c0_17, %c0_18] : memref<32x1xf32, #tpu.memory_space<vmem>>, vector<32x1xf32>
      %22 = tpu.concatenate %20, %21 in 1 : vector<32x1xf32>, vector<32x1xf32> -> vector<32x2xf32>
      %c0_19 = arith.constant 0 : index
      %c0_20 = arith.constant 0 : index
      %23 = vector.load %arg3[%c0_19, %c0_20] : memref<2x32xf32, #tpu.memory_space<vmem>>, vector<2x32xf32>
      %cst_21 = arith.constant dense<0.000000e+00> : vector<2x2xf32>
      %24 = tpu.matmul %23, %22, %cst_21 {dimension_numbers = #tpu.dot_dimension_numbers<[1], [0], [0], [1], [0, 0, 1, 1], [], []>} : vector<2x32xf32>, vector<32x2xf32>, vector<2x2xf32> -> vector<2x2xf32>
      %cst_22 = arith.constant 0.000000e+00 : f32
      %25 = vector.broadcast %cst_22 : f32 to vector<2x2xf32>
      %26 = arith.maximumf %24, %25 : vector<2x2xf32>
      %c0_23 = arith.constant 0 : index
      %c0_24 = arith.constant 0 : index
      %27 = vector.load %arg4[%c0_23, %c0_24] : memref<32x2xf32, #tpu.memory_space<vmem>>, vector<32x2xf32>
      %cst_25 = arith.constant dense<0.000000e+00> : vector<32x2xf32>
      %28 = tpu.matmul %27, %26, %cst_25 {dimension_numbers = #tpu.dot_dimension_numbers<[1], [0], [0], [1], [0, 0, 1, 1], [], []>} : vector<32x2xf32>, vector<2x2xf32>, vector<32x2xf32> -> vector<32x2xf32>
      %29 = vector.extract_strided_slice %28 {offsets = [0, 0], sizes = [32, 1], strides = [1, 1]} : vector<32x2xf32> to vector<32x1xf32>
      %30 = vector.extract_strided_slice %28 {offsets = [0, 1], sizes = [32, 1], strides = [1, 1]} : vector<32x2xf32> to vector<32x1xf32>
      %31 = arith.addf %29, %30 : vector<32x1xf32>
      %32 = arith.negf %31 : vector<32x1xf32>
      %33 = math.exp %32 : vector<32x1xf32>
      %cst_26 = arith.constant 1.000000e+00 : f32
      %34 = vector.broadcast %cst_26 : f32 to vector<32x1xf32>
      %35 = arith.addf %34, %33 : vector<32x1xf32>
      %36 = arith.divf %34, %35 : vector<32x1xf32>
      %37 = vector.shape_cast %36 : vector<32x1xf32> to vector<1x32x1xf32>
      %c0_27 = arith.constant 0 : index
      %c0_28 = arith.constant 0 : index
      %c0_29 = arith.constant 0 : index
      %38 = vector.load %arg5[%c0_27, %c0_28, %c0_29] : memref<1x32x1xf32, #tpu.memory_space<vmem>>, vector<1x32x1xf32>
      tpu.vector_store %arg5[%c0_27, %c0_28, %c0_29], %37 {strides = array<i32>} : memref<1x32x1xf32, #tpu.memory_space<vmem>>, vector<1x32x1xf32>,
    } else {
    }
    return
  }
  func.func @transform_0(%arg0: i32, %arg1: i32) -> (i32, i32, i32) {
    %c0_i32 = arith.constant 0 : i32
    %c0_i32_0 = arith.constant 0 : i32
    return %arg0, %c0_i32, %arg1 : i32, i32, i32
  }
  func.func @transform_1(%arg0: i32, %arg1: i32) -> (i32, i32) {
    %c0_i32 = arith.constant 0 : i32
    %c0_i32_0 = arith.constant 0 : i32
    %c0_i32_1 = arith.constant 0 : i32
    return %c0_i32, %c0_i32_0 : i32, i32
  }
  func.func @transform_2(%arg0: i32, %arg1: i32) -> (i32, i32) {
    %c0_i32 = arith.constant 0 : i32
    %c0_i32_0 = arith.constant 0 : i32
    %c0_i32_1 = arith.constant 0 : i32
    return %c0_i32, %c0_i32_0 : i32, i32
  }
  func.func @transform_3(%arg0: i32, %arg1: i32) -> (i32, i32, i32) {
    %c0_i32 = arith.constant 0 : i32
    %c0_i32_0 = arith.constant 0 : i32
    %c0_i32_1 = arith.constant 0 : i32
    return %arg0, %c0_i32, %c0_i32_0 : i32, i32, i32
  }
}

</mosaic_0001>

<bundles_post_ra>
// kernel: tpu_custom_call.1
= control target key start
LH: loop header
LB: loop body
LE: loop exit
PB: predicated region body
PF: predicated region fallthrough
CT: control target
= control target key end

     0   :  { %8 = vsyncpa [#allocation5], 0  ;;  %s924_s0 = inlined_call_operand.hbm [shape: f32[2,32,256], index: 0, kind: input, shape index: {}]   ;;  %s925_s1 = inlined_call_operand.vmem [shape: f32[2,32], index: 1, kind: input, shape index: {}]   ;;  %s926_s2 = inlined_call_operand.vmem [shape: f32[32,2], index: 2, kind: input, shape index: {}]   ;;  %s927_s3 = inlined_call_operand.vmem [shape: f32[2,32,1], index: 3, kind: output, shape index: {}]  }
   0x1   :  { %10 = vsyncpa [#allocation5 + $0x1], 0  ;;  %s791_s12 = smov 0   ;;  %s793_s13 = smov 0  }
   0x2   :  { %s795_s14 = smov 0   ;;  %s797_s15 = smov 0  }
   0x3   :  { %s799_s16 = smov 0   ;;  %s801_s17 = smov 0  }
   0x4 LB: > { %s569_s18 = sadd.s32 4294967295, %s763_s17   ;;  %s28_s19 = sadd.s32 1, %s759_s16  ;;  %s763_s17 = sphi %s801_s17, %s16_s17   ;;  %s759_s16 = sphi %s799_s16, %s934_s16   ;;  %s755_s15 = sphi %s797_s15, %s933_s15   ;;  %s751_s14 = sphi %s795_s14, %s932_s14   ;;  %s747_s13 = sphi %s793_s13, %s931_s13   ;;  %s743_s12 = sphi %s791_s12, %s930_s12  }
   0x5   : > { %p30_p0 = scmp.ge.s32.totalorder %s28_s19, 2  ;;  %s37_s20 = sadd.s32 1, %s751_s14 }
   0x6   : > { %p44_p1 = scmp.ne.s32.totalorder %s751_s14, %s747_s13  ;;  %p45_p2 = scmp.eq.s32.totalorder %s763_s17, 0 }
   0x7   : > { %s936_s19 = smov (%p30_p0, %s28_s19), 0  ;;  %p50_p4 = scmp.ne.s32.totalorder %s747_s13, %s743_s12 }
   0x8   : > { %p827_p3 = por %p45_p2, %p44_p1  ;;  %s32_s22 = ssub.s32 %s759_s16, %s936_s19 }
   0x9   : > { %p51_p5 = scmp.eq.s32.totalorder %s569_s18, 0  ;;  %p35_p6 = scmp.eq.s32.totalorder %s32_s22, 0 }
   0xa   : > { %p602_p8 = scmp.lt.s32.totalorder %s763_s17, 2  ;;  %s148_s25 = sand.u32 1, %s751_s14  }
   0xb   : > { %p834_p7 = por %p51_p5, %p50_p4  ;;  %s592_s26 = sshll.u32 %s759_s16, 6 }
   0xc   : > { %s840_s24 = scalar_select %p35_p6, %s751_s14, %s37_s20  }
   0xd   : > { %s573_s27 = sshll.u32 %s148_s25, 6  ;;  %s159_s30 = scalar_lea.hbm %s924_s0, %s592_s26 }
   0xe   : > { %s160_s4 = sshll.u32 %s159_s30, 4  ;;  %s152_s5 = scalar_lea.vmem [#allocation4], %s573_s27  ;;  %s161_s4 = int_to_ptr.hbm [resolvable:$true] %s160_s4 }
   0xf   : > { %s162_s6 = sshll.u32 %s152_s5, 4  ;;  %p599_p9 = pnand %p602_p8, %p827_p3  ;;  %s163_s6 = int_to_ptr.vmem [resolvable:$true] %s162_s6 }
  0x10   : > { %p576_p10 = scmp.ge.s32.totalorder %s763_s17, 1  ;;  %p170_p11 = scmp.lt.s32.totalorder %s763_s17, 3 }
  0x11   : > { %s149_s7 = scalar_lea.sflag [#allocation5], %s148_s25  ;;  %s765_s8 = smov 256  }
  0x12   : > { %s766_s9 = smov 16   ;;  %p171_p12 = pnand %p576_p10, %p170_p11 }
  0x13   : > { %601 = dma.hbm_to_vmem [thread:$0]  (!%p599_p9), %s161_s4, 1024, %s163_s6, %s149_s7, %s765_s8, %s765_s8, %s766_s9  }
  0x14   : > { %174 = sbr.rel (%p171_p12) target bundleno = 702 (0x2be), region = 32  ;;  %s176_s10 = sand.u32 (!%p171_p12), 1, %s747_s13  }
  0x15   : > { %s577_s11 = sshll.u32 (!%p171_p12), %s176_s10, 6  ;;  %s177_s12 = scalar_lea.sflag (!%p171_p12), [#allocation5], %s176_s10 }
  0x16   : > { %s180_s18 = scalar_lea.vmem (!%p171_p12), [#allocation4], %s577_s11 }
  0x19   : > { %738 = dma.done.wait (%p834_p7), %s177_s12, 1024  }
  0x1a   : > { %740 = vsyncadd (%p834_p7), %s177_s12, 4294966272  ;;  %vm214_vm0 = vcmask 7168   ;;  %v767_v0 = vmov -inf   ;;  %v225_v1 = vld [vmem:[%s180_s18 + $0x10] sm:$0xff]  ;;  %v226_v2 = vld [vmem:[%s180_s18 + $0x18] sm:$0xff]  ;;  %v768_v17 = vmov 0.0  }
  0x1b   : > { %220 = vst.msk [vmem:[#allocation3 + $0x8] sm:$0xff] %vm214_vm0, %v767_v0  ;;  %v263_v3 = vmax.f32 %v225_v1, %v226_v2  ;;  %v229_v4 = vld [vmem:[%s180_s18 + $0x30] sm:$0xff]  ;;  %v230_v5 = vld [vmem:[%s180_s18 + $0x38] sm:$0xff]  ;;  %v223_v8 = vld [vmem:[%s180_s18] sm:$0xff]  ;;  %v238_v15 = vadd.f32 %v226_v2, %v225_v1  ;;  %s769_s20 = smov 1   ;;  %vm316_vm1 = vcmask 261120  }
  0x1c   : > { %219 = vst.msk [vmem:[#allocation3] sm:$0xff] %vm214_vm0, %v767_v0  ;;  %v269_v6 = vmax.f32 %v229_v4, %v230_v5  ;;  %v244_v7 = vadd.f32 %v230_v5, %v229_v4  ;;  %v224_v9 = vld [vmem:[%s180_s18 + $0x8] sm:$0xff]  ;;  %v227_v10 = vld [vmem:[%s180_s18 + $0x20] sm:$0xff]  ;;  %vm358_vm2 = vcmask 1041408   ;;  %vm345_vm3 = vcmask 15360   ;;  %s770_s5 = smov 127  }
  0x1d   : > { %221 = vst.msk [vmem:[#allocation3 + $0x10] sm:$0xff] %vm214_vm0, %v767_v0  ;;  %264 = vmax.xlane.f32.xlu1 %v263_v3  ;;  %v228_v11 = vld [vmem:[%s180_s18 + $0x28] sm:$0xff]  ;;  %v260_v12 = vmax.f32 %v223_v8, %v224_v9  ;;  %v235_v16 = vadd.f32 %v224_v9, %v223_v8  ;;  %v315_v1 = vld [vmem:[%s925_s1] sm:$0x3]  ;;  %v343_v8 = vld [vmem:[%s926_s2 + $0x10] sm:$0xff]  ;;  %p205_p13 = scmp.lt.s32.totalorder %s755_s15, 1 }
  0x1e   : > { %222 = vst.msk [vmem:[#allocation3 + $0x18] sm:$0xff] %vm214_vm0, %v767_v0  ;;  %270 = vmax.xlane.f32.xlu0 %v269_v6  ;;  %245 = vadd.xlane.f32.xlu2 %v244_v7  ;;  %v266_v13 = vmax.f32 %v227_v10, %v228_v11  ;;  %v241_v14 = vadd.f32 %v228_v11, %v227_v10  ;;  %v341_v5 = vld [vmem:[%s926_s2] sm:$0xff]  ;;  %v342_v6 = vld [vmem:[%s926_s2 + $0x8] sm:$0xff]  ;;  %v344_v7 = vld [vmem:[%s926_s2 + $0x18] sm:$0xff] }
  0x1f   : > { %218 = vst.msk [vmem:[#allocation2 + $0x18] sm:$0xff] %vm214_vm0, %v768_v17  ;;  %s938_s15 = smov (!%p205_p13, %s755_s15), 1 }
  0x20   : > { %215 = vst.msk [vmem:[#allocation2] sm:$0xff] %vm214_vm0, %v768_v17  ;;  %s593_s6 = sshll.u32 %s938_s15, 5 }
  0x21   : > { %216 = vst.msk [vmem:[#allocation2 + $0x8] sm:$0xff] %vm214_vm0, %v768_v17  ;;  %s896_s9 = scalar_lea.vmem %s927_s3, %s593_s6 }
  0x22   : > { %217 = vst.msk [vmem:[#allocation2 + $0x10] sm:$0xff] %vm214_vm0, %v768_v17  ;;  %v257_v18 = vld [vmem:[#allocation3 + $0x8] sm:$0xff] }
  0x23   : > { %v256_v27 = vld [vmem:[#allocation3] sm:$0xff] }
  0x24   : > { %v258_v28 = vld [vmem:[#allocation3 + $0x10] sm:$0xff] }
  0x25   : > { %261 = vmax.xlane.f32.xlu1 %v260_v12  ;;  %v259_v19 = vld [vmem:[#allocation3 + $0x18] sm:$0xff] }
  0x26   : > { %267 = vmax.xlane.f32.xlu0 %v266_v13  ;;  %242 = vadd.xlane.f32.xlu2 %v241_v14  ;;  %v234_v20 = vld [vmem:[#allocation2 + $0x18] sm:$0xff] }
  0x27   : > { %v231_v45 = vld [vmem:[#allocation2] sm:$0xff] }
  0x28   : > { %v232_v42 = vld [vmem:[#allocation2 + $0x8] sm:$0xff] }
  0x29   : > { %v233_v29 = vld [vmem:[#allocation2 + $0x10] sm:$0xff] }
  0x2d   : > { %236 = vadd.xlane.f32.xlu1 %v235_v16 }
  0x2e   : > { %239 = vadd.xlane.f32.xlu0 %v238_v15 }
  0x90   : > { %v265_v21 = vpop.xlane.xlu1 %264 }
  0x91   : > { %v273_v22 = vmax.f32 %v257_v18, %v265_v21  ;;  %v271_v23 = vpop.xlane.xlu0 %270  ;;  %v246_v24 = vpop.xlane.xlu2 %245 }
  0x92   : > { %v275_v25 = vmax.f32 %v259_v19, %v271_v23  ;;  %v250_v26 = vadd.f32 %v246_v24, %v234_v20 }
  0x93   : > { %277 = vst.msk [vmem:[#allocation3 + $0x8] sm:$0xff] %vm214_vm0, %v273_v22 }
  0x94   : > { %279 = vst.msk [vmem:[#allocation3 + $0x18] sm:$0xff] %vm214_vm0, %v275_v25 }
  0x95   : > { %255 = vst.msk [vmem:[#allocation2 + $0x18] sm:$0xff] %vm214_vm0, %v250_v26 }
  0x98   : > { %v262_v30 = vpop.xlane.xlu1 %261 }
  0x99   : > { %v272_v31 = vmax.f32 %v256_v27, %v262_v30  ;;  %v268_v32 = vpop.xlane.xlu0 %267  ;;  %v243_v33 = vpop.xlane.xlu2 %242 }
  0x9a   : > { %v274_v34 = vmax.f32 %v258_v28, %v268_v32  ;;  %v249_v35 = vadd.f32 %v243_v33, %v233_v29  ;;  %v292_v38 = vld [vmem:[#allocation3 + $0x8] sm:$0xff] }
  0x9b   : > { %276 = vst.msk [vmem:[#allocation3] sm:$0xff] %vm214_vm0, %v272_v31  ;;  %v294_v36 = vld [vmem:[#allocation3 + $0x18] sm:$0xff] }
  0x9c   : > { %278 = vst.msk [vmem:[#allocation3 + $0x10] sm:$0xff] %vm214_vm0, %v274_v34  ;;  %v286_v48 = vld [vmem:[#allocation2 + $0x18] sm:$0xff] }
  0x9d   : > { %254 = vst.msk [vmem:[#allocation2 + $0x10] sm:$0xff] %vm214_vm0, %v249_v35  ;;  %v290_v50 = vmul.f32 0.00390625, %v286_v48 }
  0xa0   : > { %v237_v46 = vpop.xlane.xlu1 %236 }
  0xa1   : > { %v240_v43 = vpop.xlane.xlu0 %239  ;;  %v247_v47 = vadd.f32 %v237_v46, %v231_v45 }
  0xa2   : > { %v291_v37 = vld [vmem:[#allocation3] sm:$0xff]  ;;  %v248_v44 = vadd.f32 %v240_v43, %v232_v42 }
  0xa3   : > { %v662_v39 = vpack.i.bf16 %v291_v37, %v292_v38  ;;  %v293_v40 = vld [vmem:[#allocation3 + $0x10] sm:$0xff]  ;;  %252 = vst.msk [vmem:[#allocation2] sm:$0xff] %vm214_vm0, %v247_v47 }
  0xa4   : > { %v657_v41 = vpack.i.bf16 %v293_v40, %v294_v36  ;;  %253 = vst.msk [vmem:[#allocation2 + $0x8] sm:$0xff] %vm214_vm0, %v248_v44  ;;  %v285_v49 = vld [vmem:[#allocation2 + $0x10] sm:$0xff] }
  0xa5   : > { %663 = vrot.lane.b32.xlu0 %v662_v39, %s769_s20  ;;  %v289_v51 = vmul.f32 0.00390625, %v285_v49 }
  0xa6   : > { %658 = vrot.lane.b32.xlu2 %v657_v41, %s769_s20 }
  0xaa   : > { %v283_v58 = vld [vmem:[#allocation2] sm:$0xff] }
  0xab   : > { %v284_v57 = vld [vmem:[#allocation2 + $0x8] sm:$0xff]  ;;  %v287_v63 = vmul.f32 0.00390625, %v283_v58 }
  0xac   : > { %v288_v62 = vmul.f32 0.00390625, %v284_v57 }
 0x100   : > { %v659_v52 = vpop.permute.xlu2 %658 }
 0x101   : > { %v661_v53 = vunpack.i.h.bf16 %v659_v52  ;;  %v660_v54 = vunpack.i.l.bf16 %v659_v52 }
 0x103   : > { %v314_v55 = vsel %vm214_vm0, %v290_v50, %v660_v54  ;;  %v313_v56 = vsel %vm214_vm0, %v289_v51, %v661_v53 }
 0x104   : > { %332 = vmatpush.msra.mxu0 %v314_v55 }
 0x106   : > { %333 = vmatpush.msra.mxu0 %v313_v56 }
 0x117   : > { %v664_v59 = vpop.permute.xlu0 %663 }
 0x118   : > { %v666_v60 = vunpack.i.h.bf16 %v664_v59  ;;  %v665_v61 = vunpack.i.l.bf16 %v664_v59 }
 0x11a   : > { %v312_v0 = vsel %vm214_vm0, %v288_v62, %v665_v61  ;;  %v311_v2 = vsel %vm214_vm0, %v287_v63, %v666_v60 }
 0x11b   : > { %334 = vmatpush.msra.mxu0 %v312_v0 }
 0x11d   : > { %335 = vmatpush.msra.mxu0 %v311_v2 }
 0x11e   : > { %580 = vmatmul.msk.f32.vlgmr.msra.gmra.mxu0 %vm316_vm1, %v315_v1 }
 0x19b   : > { %v337_v3 = vpop.f32.mrf.mxu0 }
 0x19c   : > { %v340_v4 = vmax.f32 %v337_v3, 0.0 }
 0x19e   : > { %581 = vmatpush.msk.msra.mxu1 %vm358_vm2, %v340_v4  ;;  %594 = vmatpush.msk.msra.mxu2 %vm358_vm2, %v340_v4 }
 0x19f   : > { %595 = vmatpush.msk.msra.mxu3 %vm358_vm2, %v340_v4  ;;  %582 = vmatmul.msk.f32.vlgmr.msra.gmra.mxu1 %vm345_vm3, %v341_v5 }
 0x1a0   : > { %583 = vmatmul.msk.f32.vlgmr.msra.gmra.mxu2 %vm345_vm3, %v342_v6  ;;  %585 = vmatmul.msk.f32.vlgmr.msra.gmra.mxu3 %vm345_vm3, %v344_v7 }
 0x1a8   : > { %584 = vmatmul.msk.f32.gmra.mxu2 %vm345_vm3, %v343_v8 }
 0x21c   : > { %v379_v9 = vpop.f32.mrf.mxu1 }
 0x21d   : > { %395 = vrot.lane.b32.xlu1 %v379_v9, %s770_s5 }
 0x223   : > { %v382_v10 = vpop.f32.mrf.mxu2  ;;  %v388_v11 = vpop.f32.mrf.mxu3 }
 0x224   : > { %397 = vrot.lane.b32.xlu2 %v382_v10, %s770_s5 }
 0x22b   : > { %v385_v12 = vpop.f32.mrf.mxu2 }
 0x22c   : > { %401 = vrot.lane.b32.xlu2 %v388_v11, %s770_s5  ;;  %399 = vrot.lane.b32.xlu0 %v385_v12, %s770_s5 }
 0x27e   : > { %v398_v13 = vpop.permute.xlu2 %397 }
 0x27f   : > { %v408_v14 = vadd.f32 %v398_v13, %v382_v10 }
 0x281   : > { %v587_v15 = vmul.f32 -1.442695, %v408_v14 }
 0x283   : > { %667 = vpow2.f32 %v587_v15 }
 0x286   : > { %v402_v16 = vpop.permute.xlu2 %401 }
 0x287   : > { %v410_v17 = vadd.f32 %v402_v16, %v388_v11 }
 0x289   : > { %v668_v18 = vpop.eup %667  ;;  %v589_v19 = vmul.f32 -1.442695, %v410_v17 }
 0x28a   : > { %v424_v20 = vadd.f32 1.0, %v668_v18 }
 0x28b   : > { %669 = vpow2.f32 %v589_v19 }
 0x28c   : > { %671 = vrcp.f32 %v424_v20  ;;  %v453_v29 = vand.u32 2147483648, %v424_v20  ;;  %v451_v31 = vand.u32 2147483647, %v424_v20  ;;  %vm447_vm5 = vweird.f32 %v424_v20 }
 0x28e   : > { %v454_v34 = vor.u32 1.1754944e-38, %v453_v29  ;;  %vm452_vm7 = vcmp.eq.f32.partialorder %v451_v31, 8.507059e+37 }
 0x28f   : > { %v396_v21 = vpop.permute.xlu1 %395 }
 0x290   : > { %v407_v22 = vadd.f32 %v396_v21, %v379_v9 }
 0x291   : > { %v670_v23 = vpop.eup %669 }
 0x292   : > { %v672_v24 = vpop.eup %671  ;;  %v426_v25 = vadd.f32 1.0, %v670_v23  ;;  %v586_v26 = vmul.f32 -1.442695, %v407_v22 }
 0x293   : > { %v443_v27 = vmul.f32 %v672_v24, %v424_v20  ;;  %vm448_vm4 = vweird.f32 %v672_v24 }
 0x294   : > { %673 = vrcp.f32 %v426_v25  ;;  %vm449_vm6 = vmor %vm447_vm5, %vm448_vm4  ;;  %v483_v41 = vand.u32 2147483648, %v426_v25  ;;  %v481_v44 = vand.u32 2147483647, %v426_v25  ;;  %vm477_vm9 = vweird.f32 %v426_v25 }
 0x295   : > { %v444_v28 = vsub.f32 1.0, %v443_v27  ;;  %675 = vpow2.f32 %v586_v26 }
 0x296   : > { %v484_v48 = vor.u32 1.1754944e-38, %v483_v41  ;;  %vm482_vm11 = vcmp.eq.f32.partialorder %v481_v44, 8.507059e+37 }
 0x297   : > { %v445_v30 = vmul.f32 %v672_v24, %v444_v28 }
 0x299   : > { %v446_v32 = vadd.f32 %v672_v24, %v445_v30 }
 0x29a   : > { %v674_v33 = vpop.eup %673 }
 0x29b   : > { %v676_v35 = vpop.eup %675  ;;  %v450_v36 = vsel %vm449_vm6, %v672_v24, %v446_v32  ;;  %v473_v37 = vmul.f32 %v674_v33, %v426_v25  ;;  %vm478_vm8 = vweird.f32 %v674_v33 }
 0x29c   : > { %v455_v38 = vsel %vm452_vm7, %v454_v34, %v450_v36  ;;  %v423_v39 = vadd.f32 1.0, %v676_v35  ;;  %vm479_vm10 = vmor %vm477_vm9, %vm478_vm8 }
 0x29d   : > { %488 = vst.msk [vmem:[%s896_s9 + $0x8] sm:$0xff] %vm214_vm0, %v455_v38  ;;  %v474_v40 = vsub.f32 1.0, %v473_v37 }
 0x29e   : > { %677 = vrcp.f32 %v423_v39  ;;  %v400_v42 = vpop.permute.xlu0 %399  ;;  %v438_v54 = vand.u32 2147483648, %v423_v39  ;;  %v436_v57 = vand.u32 2147483647, %v423_v39  ;;  %vm432_vm13 = vweird.f32 %v423_v39 }
 0x29f   : > { %v475_v43 = vmul.f32 %v674_v33, %v474_v40  ;;  %v409_v45 = vadd.f32 %v400_v42, %v385_v12 }
 0x2a0   : > { %v439_v60 = vor.u32 1.1754944e-38, %v438_v54  ;;  %vm437_vm15 = vcmp.eq.f32.partialorder %v436_v57, 8.507059e+37 }
 0x2a1   : > { %v476_v46 = vadd.f32 %v674_v33, %v475_v43  ;;  %v588_v47 = vmul.f32 -1.442695, %v409_v45 }
 0x2a3   : > { %v480_v49 = vsel %vm479_vm10, %v674_v33, %v476_v46  ;;  %679 = vpow2.f32 %v588_v47 }
 0x2a4   : > { %v678_v50 = vpop.eup %677  ;;  %v485_v51 = vsel %vm482_vm11, %v484_v48, %v480_v49 }
 0x2a5   : > { %490 = vst.msk [vmem:[%s896_s9 + $0x18] sm:$0xff] %vm214_vm0, %v485_v51  ;;  %v428_v52 = vmul.f32 %v678_v50, %v423_v39  ;;  %vm433_vm12 = vweird.f32 %v678_v50 }
 0x2a6   : > { %vm434_vm14 = vmor %vm432_vm13, %vm433_vm12 }
 0x2a7   : > { %v429_v53 = vsub.f32 1.0, %v428_v52 }
 0x2a9   : > { %v680_v55 = vpop.eup %679  ;;  %v430_v56 = vmul.f32 %v678_v50, %v429_v53 }
 0x2aa   : > { %v425_v58 = vadd.f32 1.0, %v680_v55 }
 0x2ab   : > { %v431_v59 = vadd.f32 %v678_v50, %v430_v56 }
 0x2ac   : > { %681 = vrcp.f32 %v425_v58  ;;  %v468_v2 = vand.u32 2147483648, %v425_v58  ;;  %v466_v4 = vand.u32 2147483647, %v425_v58  ;;  %vm462_vm2 = vweird.f32 %v425_v58 }
 0x2ad   : > { %v435_v61 = vsel %vm434_vm14, %v678_v50, %v431_v59 }
 0x2ae   : > { %v440_v62 = vsel %vm437_vm15, %v439_v60, %v435_v61  ;;  %v469_v6 = vor.u32 1.1754944e-38, %v468_v2  ;;  %vm467_vm4 = vcmp.eq.f32.partialorder %v466_v4, 8.507059e+37 }
 0x2af   : > { %487 = vst.msk [vmem:[%s896_s9] sm:$0xff] %vm214_vm0, %v440_v62 }
 0x2b2   : > { %v682_v63 = vpop.eup %681 }
 0x2b3   : > { %v458_v0 = vmul.f32 %v682_v63, %v425_v58  ;;  %vm463_vm1 = vweird.f32 %v682_v63 }
 0x2b4   : > { %vm464_vm3 = vmor %vm462_vm2, %vm463_vm1 }
 0x2b5   : > { %v459_v1 = vsub.f32 1.0, %v458_v0 }
 0x2b7   : > { %v460_v3 = vmul.f32 %v682_v63, %v459_v1 }
 0x2b9   : > { %v461_v5 = vadd.f32 %v682_v63, %v460_v3 }
 0x2bb   : > { %v465_v7 = vsel %vm464_vm3, %v682_v63, %v461_v5 }
 0x2bc   : > { %v470_v8 = vsel %vm467_vm4, %v469_v6, %v465_v7 }
 0x2bd   : > { %489 = vst.msk [vmem:[%s896_s9 + $0x10] sm:$0xff] %vm214_vm0, %v470_v8 }
 0x2be PF: > { %s16_s17 = sadd.s32 1, %s763_s17   ;;  %s930_s12 = smov %s747_s13 }
 0x2bf   : > { %p13_p0 = scmp.ge.s32.totalorder %s16_s17, 4   ;;  %s931_s13 = smov %s751_s14 }
 0x2c0   : > { %s932_s14 = smov %s840_s24  ;;  %s933_s15 = smov %s759_s16 }
 0x2c1   : > { %s934_s16 = smov %s936_s19  ;;  %15 = sbr.rel (!%p13_p0) target bundleno = 4 (0x4), region = 80 }
 0x2c6   :  { %512 = vsyncpa [#allocation5], 1 }
 0x2c7   :  { %514 = vsyncpa [#allocation5 + $0x1], 1 }

</bundles_post_ra>
